<compile_context>
chip_gen: v7x
topology: tpu7x:2x2x1
jax: 0.10.0
libtpu: 0.0.40
codegen_flags: <defaults>
</compile_context>

<pallas_src>
import functools

import jax
import jax.numpy as jnp
from jax.experimental import pallas as pl
from jax.experimental.pallas import tpu as pltpu

# ----------------------------- model dims (small) -----------------------------
Z_DIM = 32
EMBED_G = 16
ZC = Z_DIM + EMBED_G          # 48  generator input features
ZC_PAD = 128                  # lane-pad generator K dim
N_CLASSES = 4
C, H, W = 4, 16, 16
CHW = C * H * W               # 1024 (already a multiple of 128)
HIDDEN_D = 128                # D feature width = full lane tile
BG_PAD = 8                    # fake batch padded to f32 sublane tile
BX_PAD = 8                    # real batch padded to f32 sublane tile
B_PAD = BG_PAD + BX_PAD       # rows seen by D
OUT_LANES = 128               # lane-dense D output slab width


def _full_spec(shape):
    # Full-array block (no grid) -> no (8,128) divisibility constraint.
    return pl.BlockSpec(shape, lambda: tuple(0 for _ in shape))


# ------------------------------- fused G+D kernel ------------------------------
def _gd_fused_kernel(zc_ref, x_ref, proj_ref, wg_ref, bg_ref, w1_ref, b1_ref,
                     gz_ref, dout_ref, din_ref):
    """Fused generator + discriminator forward.

    G:  G_z  = tanh(zc @ Wg + bg)                       [BG_PAD, CHW]
    cat: D_in = [G_z ; x]  (built directly in VMEM)     [B_PAD,  CHW]
    D:  feat = relu(D_in @ W1 + b1)                     [B_PAD,  HIDDEN_D]
        out  = feat @ wo + sum(Ed[y]*feat)  ==  sum(feat * (Ed[y] + wo^T))
    """
    # ---- Generator (bf16 MXU, f32 accumulate, f32 elementwise) ----
    g_flat = jnp.tanh(
        jnp.dot(zc_ref[...].astype(jnp.bfloat16), wg_ref[...],
                preferred_element_type=jnp.float32)
        + bg_ref[...])
    gz_ref[...] = g_flat

    # ---- torch.cat([G_z, x], 0) equivalent, in VMEM scratch (no HBM round trip) ----
    din_ref[pl.ds(0, BG_PAD), :] = g_flat
    din_ref[pl.ds(BG_PAD, BX_PAD), :] = x_ref[...]

    # ---- Discriminator feature extractor ----
    feat = jnp.dot(din_ref[...].astype(jnp.bfloat16), w1_ref[...],
                   preferred_element_type=jnp.float32)
    feat = jnp.maximum(feat + b1_ref[...], 0.0)

    # ---- projection head folded into one reduce (no N=1 matmul) ----
    score = jnp.sum(feat * proj_ref[...], axis=-1, keepdims=True)   # [B_PAD, 1]
    # lane-dense output slab (unmasked stores); wrapper slices column 0.
    dout_ref[...] = jnp.broadcast_to(score, dout_ref.shape)


def gd_fused_pallas(zc_pad, x_pad, proj_pad, Wg, bg, W1, b1):
    return pl.pallas_call(
        _gd_fused_kernel,
        out_shape=(
            jax.ShapeDtypeStruct((BG_PAD, CHW), jnp.float32),        # G_z (flat)
            jax.ShapeDtypeStruct((B_PAD, OUT_LANES), jnp.float32),   # D scores (lane-dense)
        ),
        in_specs=[
            _full_spec(zc_pad.shape),
            _full_spec(x_pad.shape),
            _full_spec(proj_pad.shape),
            _full_spec(Wg.shape),
            _full_spec(bg.shape),
            _full_spec(W1.shape),
            _full_spec(b1.shape),
        ],
        out_specs=(
            _full_spec((BG_PAD, CHW)),
            _full_spec((B_PAD, OUT_LANES)),
        ),
        scratch_shapes=[pltpu.VMEM((B_PAD, CHW), jnp.float32)],      # fused D_input
    )(zc_pad, x_pad, proj_pad, Wg, bg, W1, b1)


# ------------------------------ parameter setup ------------------------------
def init_params(key):
    ks = jax.random.split(key, 5)
    scale = 0.05
    Wg = scale * jax.random.normal(ks[1], (ZC, CHW), jnp.float32)
    Wg_pad = jnp.zeros((ZC_PAD, CHW), jnp.float32).at[:ZC].set(Wg)   # zero-pad K dim once
    return {
        # Generator: class embedding + linear-to-image (weights kept bf16 for the MXU)
        "Eg": scale * jax.random.normal(ks[0], (N_CLASSES, EMBED_G), jnp.float32),
        "Wg": Wg_pad.astype(jnp.bfloat16),                           # [ZC_PAD, CHW]
        "bg": jnp.zeros((1, CHW), jnp.float32),
        # Discriminator: linear feature extractor + projection head
        "W1": (scale * jax.random.normal(ks[2], (CHW, HIDDEN_D), jnp.float32)
               ).astype(jnp.bfloat16),                               # [CHW, HIDDEN_D]
        "b1": jnp.zeros((1, HIDDEN_D), jnp.float32),
        "wo": scale * jax.random.normal(ks[3], (HIDDEN_D, 1), jnp.float32),
        "Ed": scale * jax.random.normal(ks[4], (N_CLASSES, HIDDEN_D), jnp.float32),
    }


# -------------------------------- G_D forward ---------------------------------
@functools.partial(jax.jit, static_argnames=("train_G", "return_G_z"))
def g_d_forward(params, z, gy, x=None, dy=None, train_G=False, return_G_z=False):
    # train_G only toggles grad tracking in PyTorch; no effect on forward values.
    Bg = z.shape[0]

    # Generator input: concat(z, embed(gy)), padded to (BG_PAD, ZC_PAD).
    eg = jnp.take(params["Eg"], gy, axis=0)                          # [Bg, EMBED_G]
    zc = jnp.concatenate([z, eg], axis=1)                            # [Bg, ZC]
    zc_pad = jnp.zeros((BG_PAD, ZC_PAD), jnp.float32).at[:Bg, :ZC].set(zc)

    # Real images (or zeros for fake-only branches), padded to (BX_PAD, CHW).
    if x is not None:
        Bx = x.shape[0]
        x_pad = jnp.zeros((BX_PAD, CHW), jnp.float32).at[:Bx].set(x.reshape(Bx, CHW))
        labels = jnp.concatenate([gy, dy], axis=0)                   # torch.cat([gy, dy], 0)
    else:
        Bx = 0
        x_pad = jnp.zeros((BX_PAD, CHW), jnp.float32)
        labels = gy

    # Per-row projection vector with the N=1 output head folded in: Ed[y] + wo^T.
    emb = jnp.take(params["Ed"], labels, axis=0)                     # [Bg(+Bx), HIDDEN_D]
    proj = emb + params["wo"].reshape(1, HIDDEN_D)
    proj_pad = jnp.zeros((B_PAD, HIDDEN_D), jnp.float32).at[:Bg].set(proj[:Bg])
    if x is not None:
        proj_pad = proj_pad.at[BG_PAD:BG_PAD + Bx].set(proj[Bg:])

    gz_pad, dout_pad = gd_fused_pallas(
        zc_pad, x_pad, proj_pad,
        params["Wg"], params["bg"], params["W1"], params["b1"])

    d_fake = dout_pad[:Bg, 0:1]
    G_z = gz_pad[:Bg].reshape(Bg, C, H, W)                           # NCHW
    if x is not None:
        d_real = dout_pad[BG_PAD:BG_PAD + Bx, 0:1]
        return d_fake, d_real                                        # torch.split equivalent
    elif return_G_z:
        return d_fake, G_z
    else:
        return d_fake


# --------------------------- pure-JAX reference (check) ------------------------
def _ref_forward(params, z, gy, x, dy):
    eg = jnp.take(params["Eg"], gy, axis=0)
    zc = jnp.concatenate([z, eg], axis=1)
    g_flat = jnp.tanh(
        jnp.dot(zc.astype(jnp.bfloat16), params["Wg"][:ZC],
                preferred_element_type=jnp.float32) + params["bg"])
    d_in = g_flat if x is None else jnp.concatenate(
        [g_flat, x.reshape(x.shape[0], CHW)], axis=0)
    labels = gy if dy is None else jnp.concatenate([gy, dy], axis=0)
    feat = jnp.maximum(
        jnp.dot(d_in.astype(jnp.bfloat16), params["W1"],
                preferred_element_type=jnp.float32) + params["b1"], 0.0)
    emb = jnp.take(params["Ed"], labels, axis=0)
    out = feat @ params["wo"] + jnp.sum(emb * feat, axis=-1, keepdims=True)
    return out, g_flat.reshape(-1, C, H, W)


# ----------------------------------- main -------------------------------------
if __name__ == "__main__":
    key = jax.random.PRNGKey(0)
    k_p, k_z, k_x, k_gy, k_dy = jax.random.split(key, 5)

    params = init_params(k_p)

    Bg, Bx = 2, 2
    z = jax.random.normal(k_z, (Bg, Z_DIM), jnp.float32)
    gy = jax.random.randint(k_gy, (Bg,), 0, N_CLASSES)
    x = jax.random.normal(k_x, (Bx, C, H, W), jnp.float32)   # real images, NCHW
    dy = jax.random.randint(k_dy, (Bx,), 0, N_CLASSES)

    # Branch 1: both fake and real -> returns split (D_fake, D_real)
    d_fake, d_real = g_d_forward(params, z, gy, x=x, dy=dy)
    jax.block_until_ready(d_fake)
    jax.block_until_ready(d_real)
    assert d_fake.shape == (Bg, 1) and d_real.shape == (Bx, 1)

    # Sanity check vs pure-JAX reference
    ref_out, ref_gz = _ref_forward(params, z, gy, x, dy)
    assert jnp.allclose(d_fake, ref_out[:Bg], rtol=1e-2, atol=1e-3)
    assert jnp.allclose(d_real, ref_out[Bg:], rtol=1e-2, atol=1e-3)

    # Branch 2: fake only, also return G_z
    d_out, g_z = g_d_forward(params, z, gy, return_G_z=True)
    jax.block_until_ready(d_out)
    jax.block_until_ready(g_z)
    assert d_out.shape == (Bg, 1) and g_z.shape == (Bg, C, H, W)
    assert jnp.allclose(g_z, ref_gz, rtol=1e-2, atol=1e-3)

    # Branch 3: fake only
    d_only = g_d_forward(params, z, gy)
    jax.block_until_ready(d_only)
    assert d_only.shape == (Bg, 1)
    # fake-row scores are independent of the real rows -> must match branch 1
    assert jnp.allclose(d_only, d_fake, rtol=1e-4, atol=1e-5)

    print("KERNEL_OK")
</pallas_src>

<mosaic_0001>
module attributes {stable_mosaic.version = 11 : i64} {
  func.func @_gd_fused_kernel(%arg0: memref<8x128xf32, #tpu.memory_space<vmem>>, %arg1: memref<8x1024xf32, #tpu.memory_space<vmem>>, %arg2: memref<16x128xf32, #tpu.memory_space<vmem>>, %arg3: memref<128x1024xbf16, #tpu.memory_space<vmem>>, %arg4: memref<1x1024xf32, #tpu.memory_space<vmem>>, %arg5: memref<1024x128xbf16, #tpu.memory_space<vmem>>, %arg6: memref<1x128xf32, #tpu.memory_space<vmem>>, %arg7: memref<8x1024xf32, #tpu.memory_space<vmem>>, %arg8: memref<16x128xf32, #tpu.memory_space<vmem>>, %arg9: memref<16x1024xf32, #tpu.memory_space<vmem>>) attributes {dimension_semantics = [], scalar_prefetch = 0 : i64, scratch_operands = 1 : i64, tpu.core_type = #tpu.core_type<tc>} {
    %c0 = arith.constant 0 : index
    %c0_0 = arith.constant 0 : index
    %0 = vector.load %arg0[%c0, %c0_0] : memref<8x128xf32, #tpu.memory_space<vmem>>, vector<8x128xf32>
    %1 = arith.truncf %0 : vector<8x128xf32> to vector<8x128xbf16>
    %c0_1 = arith.constant 0 : index
    %c0_2 = arith.constant 0 : index
    %2 = vector.load %arg3[%c0_1, %c0_2] : memref<128x1024xbf16, #tpu.memory_space<vmem>>, vector<128x1024xbf16>
    %cst = arith.constant dense<0.000000e+00> : vector<8x1024xf32>
    %3 = tpu.matmul %1, %2, %cst {dimension_numbers = #tpu.dot_dimension_numbers<[1], [0], [0], [1], [0, 0, 1, 1], [], []>} : vector<8x128xbf16>, vector<128x1024xbf16>, vector<8x1024xf32> -> vector<8x1024xf32>
    %c0_3 = arith.constant 0 : index
    %c0_4 = arith.constant 0 : index
    %4 = vector.load %arg4[%c0_3, %c0_4] : memref<1x1024xf32, #tpu.memory_space<vmem>>, vector<1x1024xf32>
    %5 = vector.broadcast %4 : vector<1x1024xf32> to vector<8x1024xf32>
    %6 = arith.addf %3, %5 : vector<8x1024xf32>
    %7 = math.tanh %6 : vector<8x1024xf32>
    %c0_5 = arith.constant 0 : index
    %c0_6 = arith.constant 0 : index
    %8 = vector.load %arg7[%c0_5, %c0_6] : memref<8x1024xf32, #tpu.memory_space<vmem>>, vector<8x1024xf32>
    tpu.vector_store %arg7[%c0_5, %c0_6], %7 {strides = array<i32>} : memref<8x1024xf32, #tpu.memory_space<vmem>>, vector<8x1024xf32>,
    %c0_7 = arith.constant 0 : index
    %c0_8 = arith.constant 0 : index
    %9 = vector.load %arg9[%c0_7, %c0_8] : memref<16x1024xf32, #tpu.memory_space<vmem>>, vector<8x1024xf32>
    tpu.vector_store %arg9[%c0_7, %c0_8], %7 {strides = array<i32>} : memref<16x1024xf32, #tpu.memory_space<vmem>>, vector<8x1024xf32>,
    %c0_9 = arith.constant 0 : index
    %c0_10 = arith.constant 0 : index
    %10 = vector.load %arg1[%c0_9, %c0_10] : memref<8x1024xf32, #tpu.memory_space<vmem>>, vector<8x1024xf32>
    %c8 = arith.constant 8 : index
    %c0_11 = arith.constant 0 : index
    %11 = vector.load %arg9[%c8, %c0_11] : memref<16x1024xf32, #tpu.memory_space<vmem>>, vector<8x1024xf32>
    tpu.vector_store %arg9[%c8, %c0_11], %10 {strides = array<i32>} : memref<16x1024xf32, #tpu.memory_space<vmem>>, vector<8x1024xf32>,
    %c0_12 = arith.constant 0 : index
    %c0_13 = arith.constant 0 : index
    %12 = vector.load %arg9[%c0_12, %c0_13] : memref<16x1024xf32, #tpu.memory_space<vmem>>, vector<16x1024xf32>
    %13 = arith.truncf %12 : vector<16x1024xf32> to vector<16x1024xbf16>
    %c0_14 = arith.constant 0 : index
    %c0_15 = arith.constant 0 : index
    %14 = vector.load %arg5[%c0_14, %c0_15] : memref<1024x128xbf16, #tpu.memory_space<vmem>>, vector<1024x128xbf16>
    %cst_16 = arith.constant dense<0.000000e+00> : vector<16x128xf32>
    %15 = tpu.matmul %13, %14, %cst_16 {dimension_numbers = #tpu.dot_dimension_numbers<[1], [0], [0], [1], [0, 0, 1, 1], [], []>} : vector<16x1024xbf16>, vector<1024x128xbf16>, vector<16x128xf32> -> vector<16x128xf32>
    %c0_17 = arith.constant 0 : index
    %c0_18 = arith.constant 0 : index
    %16 = vector.load %arg6[%c0_17, %c0_18] : memref<1x128xf32, #tpu.memory_space<vmem>>, vector<1x128xf32>
    %17 = vector.broadcast %16 : vector<1x128xf32> to vector<16x128xf32>
    %18 = arith.addf %15, %17 : vector<16x128xf32>
    %cst_19 = arith.constant 0.000000e+00 : f32
    %19 = vector.broadcast %cst_19 : f32 to vector<16x128xf32>
    %20 = arith.maximumf %18, %19 : vector<16x128xf32>
    %c0_20 = arith.constant 0 : index
    %c0_21 = arith.constant 0 : index
    %21 = vector.load %arg2[%c0_20, %c0_21] : memref<16x128xf32, #tpu.memory_space<vmem>>, vector<16x128xf32>
    %22 = arith.mulf %20, %21 : vector<16x128xf32>
    %cst_22 = arith.constant dense<0.000000e+00> : vector<16xf32>
    %23 = vector.multi_reduction <add>, %22, %cst_22 [1] : vector<16x128xf32> to vector<16xf32>
    %24 = vector.shape_cast %23 : vector<16xf32> to vector<16x1xf32>
    %25 = vector.shape_cast %24 : vector<16x1xf32> to vector<16x1xf32>
    %26 = vector.broadcast %25 : vector<16x1xf32> to vector<16x128xf32>
    %c0_23 = arith.constant 0 : index
    %c0_24 = arith.constant 0 : index
    %27 = vector.load %arg8[%c0_23, %c0_24] : memref<16x128xf32, #tpu.memory_space<vmem>>, vector<16x128xf32>
    tpu.vector_store %arg8[%c0_23, %c0_24], %26 {strides = array<i32>} : memref<16x128xf32, #tpu.memory_space<vmem>>, vector<16x128xf32>,
    return
  }
}

</mosaic_0001>

<bundles_post_ra>
// kernel: g_d_forward.1
= control target key start
LH: loop header
LB: loop body
LE: loop exit
PB: predicated region body
PF: predicated region fallthrough
CT: control target
= control target key end

     0   :  { %14 = vsyncpa [#allocation4], 0  ;;  %s1970_s0 = inlined_call_operand.vmem [shape: f32[8,128], index: 0, kind: input, shape index: {}]   ;;  %s1971_s1 = inlined_call_operand.vmem [shape: f32[8,1024], index: 1, kind: input, shape index: {}]   ;;  %s1972_s2 = inlined_call_operand.vmem [shape: f32[16,128], index: 2, kind: input, shape index: {}]   ;;  %s1973_s3 = inlined_call_operand.hbm [shape: bf16[128,1024], index: 3, kind: input, shape index: {}]   ;;  %s1974_s4 = inlined_call_operand.vmem [shape: f32[1,1024], index: 4, kind: input, shape index: {}]   ;;  %s1975_s5 = inlined_call_operand.hbm [shape: bf16[1024,128], index: 5, kind: input, shape index: {}]   ;;  %s1976_s6 = inlined_call_operand.vmem [shape: f32[1,128], index: 6, kind: input, shape index: {}]   ;;  %s1977_s7 = inlined_call_operand.hbm [shape: f32[8,1024], index: 7, kind: output, shape index: {0}]   ;;  %s1978_s8 = inlined_call_operand.vmem [shape: f32[16,128], index: 8, kind: output, shape index: {1}]  }
   0x1   :  { %15 = vsyncpa [#allocation7], 0 }
   0x2   :  { %16 = vsyncpa [#allocation5], 0  ;;  %s1806_s27 = smov [#allocation3]   ;;  %s1734_s9 = scalar_lea.hbm %s1973_s3, 8192 }
   0x3   :  { %s28_s28 = sshll.u32 %s1806_s27, 4  ;;  %p1735_p0 = scmp.ne.s32.totalorder %s1973_s3, %s1734_s9  ;;  %s29_s28 = int_to_ptr.vmem [resolvable:$true] %s28_s28 }
   0x4   :  { %p1738_p1 = scmp.lt.u32.totalorder %s1734_s9, %s1973_s3 }
   0x6   :  { %p1740_p2 = pnand %p1738_p1, %p1735_p0 }
   0x8   :  { %1743 = shalt.err (!%p1740_p2)
}
   0x9   :  { %s1744_s14 = scalar_lea.vmem %s29_s28, 8192  ;;  %p1749_p4 = scmp.lt.s32.totalorder %s29_s28, %s29_s28 }
   0xa   :  { %p1745_p3 = scmp.ne.s32.totalorder %s29_s28, %s1744_s14  ;;  %p1750_p5 = scmp.lt.s32.totalorder %s1744_s14, %s1744_s14 }
   0xc   :  { %p1751_p6 = por %p1750_p5, %p1749_p4 }
   0xe   :  { %p1752_p7 = pnand %p1751_p6, %p1745_p3 }
  0x10   :  { %1755 = shalt.err (!%p1752_p7)
}
  0x11   :  { %s1807_s15 = smov 512   ;;  %s1808_s16 = smov 32  }
  0x12   :  { %34 = dma.hbm_to_vmem [thread:$0]  %s1973_s3, 8192, %s29_s28, [#allocation4], %s1807_s15, %s1807_s15, %s1808_s16  }
  0x13   :  { %s1809_s19 = smov [#allocation6]   ;;  %s1756_s23 = scalar_lea.hbm %s1975_s5, 8192 }
  0x14   :  { %s42_s20 = sshll.u32 %s1809_s19, 4  ;;  %p1757_p8 = scmp.ne.s32.totalorder %s1975_s5, %s1756_s23  ;;  %s43_s20 = int_to_ptr.vmem [resolvable:$true] %s42_s20 }
  0x15   :  { %p1760_p9 = scmp.lt.u32.totalorder %s1756_s23, %s1975_s5 }
  0x17   :  { %p1762_p10 = pnand %p1760_p9, %p1757_p8 }
  0x19   :  { %1765 = shalt.err (!%p1762_p10)
}
  0x1a   :  { %s1766_s29 = scalar_lea.vmem %s43_s20, 8192  ;;  %p1771_p12 = scmp.lt.s32.totalorder %s43_s20, %s43_s20 }
  0x1b   :  { %p1767_p11 = scmp.ne.s32.totalorder %s43_s20, %s1766_s29  ;;  %p1772_p13 = scmp.lt.s32.totalorder %s1766_s29, %s1766_s29 }
  0x1d   :  { %p1773_p0 = por %p1772_p13, %p1771_p12 }
  0x1f   :  { %p1774_p1 = pnand %p1773_p0, %p1767_p11 }
  0x21   :  { %1777 = shalt.err (!%p1774_p1)
}
  0x22   :  { %s1810_s3 = smov 64   ;;  %s1811_s28 = smov 4  }
  0x23   :  { %48 = dma.hbm_to_vmem [thread:$0]  %s1975_s5, 8192, %s43_s20, [#allocation7], %s1810_s3, %s1810_s3, %s1811_s28  }
  0x24   :  { %1800 = dma.done.wait [#allocation4], 8192  }
  0x25   :  { %1801 = vsyncadd [#allocation4], 4294959104 }
  0x26   :  { %1802 = dma.done.wait [#allocation7], 8192  }
  0x27   :  { %1803 = vsyncadd [#allocation7], 4294959104  ;;  %v1812_v0 = vmov 0   ;;  %v60_v1 = vld [vmem:[#allocation3] sm:$0xff]  ;;  %v61_v3 = vld [vmem:[#allocation3 + $0x8] sm:$0xff]  ;;  %s1813_s30 = smov [#allocation8]  }
  0x28   :  { %518 = vmatprep.mubr.bf16.mxu0 %v1812_v0  ;;  %559 = vmatprep.mubr.bf16.mxu1 %v1812_v0  ;;  %v64_v2 = vld [vmem:[#allocation3 + $0x20] sm:$0xff]  ;;  %v65_v5 = vld [vmem:[#allocation3 + $0x28] sm:$0xff]  ;;  %v62_v60 = vld [vmem:[#allocation3 + $0x10] sm:$0xff]  ;;  %s1415_s9 = sshll.u32 %s1813_s30, 4  ;;  %s1416_s9 = int_to_ptr.vmem [resolvable:$true] %s1415_s9 }
  0x29   :  { %v1430_v4 = vcombine.high %v60_v1, %v64_v2  ;;  %v1429_v6 = vcombine.low %v60_v1, %v64_v2  ;;  %v68_v7 = vld [vmem:[#allocation3 + $0x40] sm:$0xff]  ;;  %v1432_v9 = vcombine.high %v61_v3, %v65_v5  ;;  %v1431_v10 = vcombine.low %v61_v3, %v65_v5  ;;  %v69_v12 = vld [vmem:[#allocation3 + $0x48] sm:$0xff]  ;;  %v66_v63 = vld [vmem:[#allocation3 + $0x30] sm:$0xff]  ;;  %s1778_s5 = scalar_lea.vmem %s1416_s9, 1024  ;;  %p1783_p3 = scmp.lt.s32.totalorder %s1416_s9, %s1416_s9 }
  0x2a   :  { %v72_v8 = vld [vmem:[#allocation3 + $0x60] sm:$0xff]  ;;  %v73_v13 = vld [vmem:[#allocation3 + $0x68] sm:$0xff]  ;;  %v63_v3 = vld [vmem:[#allocation3 + $0x18] sm:$0xff]  ;;  %p1779_p2 = scmp.ne.s32.totalorder %s1416_s9, %s1778_s5  ;;  %p1784_p4 = scmp.lt.s32.totalorder %s1778_s5, %s1778_s5 }
  0x2b   :  { %v1438_v11 = vcombine.high %v68_v7, %v72_v8  ;;  %v76_v14 = vld [vmem:[#allocation3 + $0x80] sm:$0xff]  ;;  %486 = vmatprep.subr.bf16.mxu0 %v1430_v4  ;;  %v1440_v15 = vcombine.high %v69_v12, %v73_v13  ;;  %v77_v17 = vld [vmem:[#allocation3 + $0x88] sm:$0xff]  ;;  %527 = vmatprep.subr.bf16.mxu1 %v1432_v9  ;;  %v1437_v19 = vcombine.low %v68_v7, %v72_v8  ;;  %v67_v4 = vld [vmem:[#allocation3 + $0x38] sm:$0xff] }
  0x2c   :  { %v80_v16 = vld [vmem:[#allocation3 + $0xa0] sm:$0xff]  ;;  %v81_v18 = vld [vmem:[#allocation3 + $0xa8] sm:$0xff]  ;;  %487 = vmatpush1.bf16.msra.mxu0 %v1429_v6  ;;  %528 = vmatpush1.bf16.msra.mxu1 %v1431_v10  ;;  %v1439_v20 = vcombine.low %v69_v12, %v73_v13  ;;  %v70_v6 = vld [vmem:[#allocation3 + $0x50] sm:$0xff]  ;;  %v1434_v8 = vcombine.high %v62_v60, %v66_v63  ;;  %v1436_v10 = vcombine.high %v63_v3, %v67_v4  ;;  %p1785_p5 = por %p1784_p4, %p1783_p3 }
  0x2d   :  { %488 = vmatprep.subr.bf16.mxu0 %v1438_v11  ;;  %v1446_v21 = vcombine.high %v76_v14, %v80_v16  ;;  %529 = vmatprep.subr.bf16.mxu1 %v1440_v15  ;;  %v1448_v22 = vcombine.high %v77_v17, %v81_v18  ;;  %v84_v23 = vld [vmem:[#allocation3 + $0xc0] sm:$0xff]  ;;  %v85_v25 = vld [vmem:[#allocation3 + $0xc8] sm:$0xff]  ;;  %v1445_v27 = vcombine.low %v76_v14, %v80_v16  ;;  %v74_v9 = vld [vmem:[#allocation3 + $0x70] sm:$0xff] }
  0x2e   :  { %v88_v24 = vld [vmem:[#allocation3 + $0xe0] sm:$0xff]  ;;  %v89_v26 = vld [vmem:[#allocation3 + $0xe8] sm:$0xff]  ;;  %v1447_v28 = vcombine.low %v77_v17, %v81_v18  ;;  %v71_v11 = vld [vmem:[#allocation3 + $0x58] sm:$0xff]  ;;  %v1433_v14 = vcombine.low %v62_v60, %v66_v63  ;;  %v1435_v16 = vcombine.low %v63_v3, %v67_v4  ;;  %v1442_v17 = vcombine.high %v70_v6, %v74_v9  ;;  %p1786_p6 = pnand %p1785_p5, %p1779_p2 }
  0x2f   :  { %v1454_v29 = vcombine.high %v84_v23, %v88_v24  ;;  %v1456_v30 = vcombine.high %v85_v25, %v89_v26  ;;  %v92_v31 = vld [vmem:[#allocation3 + $0x100] sm:$0xff]  ;;  %v93_v33 = vld [vmem:[#allocation3 + $0x108] sm:$0xff]  ;;  %v1453_v35 = vcombine.low %v84_v23, %v88_v24  ;;  %v1455_v36 = vcombine.low %v85_v25, %v89_v26  ;;  %v75_v13 = vld [vmem:[#allocation3 + $0x78] sm:$0xff] }
  0x30   :  { %489 = vmatpush1.bf16.msra.mxu0 %v1437_v19  ;;  %530 = vmatpush1.bf16.msra.mxu1 %v1439_v20  ;;  %v96_v32 = vld [vmem:[#allocation3 + $0x120] sm:$0xff]  ;;  %v97_v34 = vld [vmem:[#allocation3 + $0x128] sm:$0xff]  ;;  %v78_v15 = vld [vmem:[#allocation3 + $0x90] sm:$0xff]  ;;  %v1444_v19 = vcombine.high %v71_v11, %v75_v13  ;;  %v1443_v25 = vcombine.low %v71_v11, %v75_v13 }
  0x31   :  { %490 = vmatprep.subr.bf16.mxu0 %v1446_v21  ;;  %531 = vmatprep.subr.bf16.mxu1 %v1448_v22  ;;  %v1462_v37 = vcombine.high %v92_v31, %v96_v32  ;;  %v1464_v38 = vcombine.high %v93_v33, %v97_v34  ;;  %v100_v39 = vld [vmem:[#allocation3 + $0x140] sm:$0xff]  ;;  %v101_v41 = vld [vmem:[#allocation3 + $0x148] sm:$0xff]  ;;  %v1461_v43 = vcombine.low %v92_v31, %v96_v32  ;;  %v82_v18 = vld [vmem:[#allocation3 + $0xb0] sm:$0xff] }
  0x32   :  { %v104_v40 = vld [vmem:[#allocation3 + $0x160] sm:$0xff]  ;;  %v105_v42 = vld [vmem:[#allocation3 + $0x168] sm:$0xff]  ;;  %v1463_v44 = vcombine.low %v93_v33, %v97_v34  ;;  %v79_v20 = vld [vmem:[#allocation3 + $0x98] sm:$0xff]  ;;  %v1441_v22 = vcombine.low %v70_v6, %v74_v9  ;;  %v1450_v26 = vcombine.high %v78_v15, %v82_v18 }
  0x33   :  { %v1470_v45 = vcombine.high %v100_v39, %v104_v40  ;;  %v1472_v46 = vcombine.high %v101_v41, %v105_v42  ;;  %v108_v47 = vld [vmem:[#allocation3 + $0x180] sm:$0xff]  ;;  %v109_v49 = vld [vmem:[#allocation3 + $0x188] sm:$0xff]  ;;  %v1469_v51 = vcombine.low %v100_v39, %v104_v40  ;;  %v1471_v52 = vcombine.low %v101_v41, %v105_v42  ;;  %v83_v21 = vld [vmem:[#allocation3 + $0xb8] sm:$0xff] }
  0x34   :  { %491 = vmatpush1.bf16.msra.mxu0 %v1445_v27  ;;  %532 = vmatpush1.bf16.msra.mxu1 %v1447_v28  ;;  %v112_v48 = vld [vmem:[#allocation3 + $0x1a0] sm:$0xff]  ;;  %v113_v50 = vld [vmem:[#allocation3 + $0x1a8] sm:$0xff]  ;;  %v86_v23 = vld [vmem:[#allocation3 + $0xd0] sm:$0xff]  ;;  %v1451_v33 = vcombine.low %v79_v20, %v83_v21 }
  0x35   :  { %492 = vmatprep.subr.bf16.mxu0 %v1454_v29  ;;  %533 = vmatprep.subr.bf16.mxu1 %v1456_v30  ;;  %v1478_v53 = vcombine.high %v108_v47, %v112_v48  ;;  %v116_v54 = vld [vmem:[#allocation3 + $0x1c0] sm:$0xff]  ;;  %v1480_v56 = vcombine.high %v109_v49, %v113_v50  ;;  %v117_v57 = vld [vmem:[#allocation3 + $0x1c8] sm:$0xff]  ;;  %v1477_v59 = vcombine.low %v108_v47, %v112_v48  ;;  %v90_v24 = vld [vmem:[#allocation3 + $0xf0] sm:$0xff] }
  0x36   :  { %v120_v55 = vld [vmem:[#allocation3 + $0x1e0] sm:$0xff]  ;;  %v121_v58 = vld [vmem:[#allocation3 + $0x1e8] sm:$0xff]  ;;  %v1479_v61 = vcombine.low %v109_v49, %v113_v50  ;;  %v87_v27 = vld [vmem:[#allocation3 + $0xd8] sm:$0xff]  ;;  %v1452_v29 = vcombine.high %v79_v20, %v83_v21  ;;  %v1449_v30 = vcombine.low %v78_v15, %v82_v18  ;;  %v1458_v34 = vcombine.high %v86_v23, %v90_v24 }
  0x37   :  { %v1486_v62 = vcombine.high %v116_v54, %v120_v55  ;;  %v1488_v1 = vcombine.high %v117_v57, %v121_v58  ;;  %v58_v2 = vld [vmem:[%s1970_s0] sm:$0xff]  ;;  %v1485_v5 = vcombine.low %v116_v54, %v120_v55  ;;  %v1487_v7 = vcombine.low %v117_v57, %v121_v58  ;;  %v91_v28 = vld [vmem:[#allocation3 + $0xf8] sm:$0xff]  ;;  %v94_v31 = vld [vmem:[#allocation3 + $0x110] sm:$0xff] }
  0x38   :  { %493 = vmatpush1.bf16.msra.mxu0 %v1453_v35  ;;  %534 = vmatpush1.bf16.msra.mxu1 %v1455_v36  ;;  %v1888_v12 = vpack.c.bf16 %v58_v2, %v58_v2  ;;  %v98_v32 = vld [vmem:[#allocation3 + $0x130] sm:$0xff]  ;;  %v95_v35 = vld [vmem:[#allocation3 + $0x118] sm:$0xff]  ;;  %v1459_v41 = vcombine.low %v87_v27, %v91_v28  ;;  %v1654_v2 = vld [vmem:[#allocation6 + $0x40] sm:$0xff]  }
  0x39   :  { %494 = vmatprep.subr.bf16.mxu0 %v1462_v37  ;;  %535 = vmatprep.subr.bf16.mxu1 %v1464_v38  ;;  %v99_v36 = vld [vmem:[#allocation3 + $0x138] sm:$0xff]  ;;  %v1460_v37 = vcombine.high %v87_v27, %v91_v28  ;;  %v1457_v38 = vcombine.low %v86_v23, %v90_v24  ;;  %v102_v39 = vld [vmem:[#allocation3 + $0x150] sm:$0xff]  ;;  %v1655_v4 = vld [vmem:[#allocation6 + $0xc0] sm:$0xff]  }
  0x3a   :  { %v106_v40 = vld [vmem:[#allocation3 + $0x170] sm:$0xff]  ;;  %v103_v42 = vld [vmem:[#allocation3 + $0x158] sm:$0xff]  ;;  %v1467_v48 = vcombine.low %v95_v35, %v99_v36  ;;  %v1656_v6 = vld [vmem:[#allocation6] sm:$0xff]  }
  0x3b   :  { %v114_v47 = vld [vmem:[#allocation3 + $0x1b0] sm:$0xff]  ;;  %v1474_v49 = vcombine.high %v102_v39, %v106_v40  ;;  %v111_v50 = vld [vmem:[#allocation3 + $0x198] sm:$0xff]  ;;  %v1659_v9 = vld [vmem:[#allocation6 + $0xc8] sm:$0xff]  }
  0x3c   :  { %495 = vmatpush1.bf16.msra.mxu0 %v1461_v43  ;;  %536 = vmatpush1.bf16.msra.mxu1 %v1463_v44  ;;  %v107_v43 = vld [vmem:[#allocation3 + $0x178] sm:$0xff]  ;;  %v1468_v44 = vcombine.high %v95_v35, %v99_v36  ;;  %v118_v54 = vld [vmem:[#allocation3 + $0x1d0] sm:$0xff]  ;;  %v1661_v11 = vld [vmem:[#allocation6 + $0x88] sm:$0xff]  }
  0x3d   :  { %496 = vmatprep.subr.bf16.mxu0 %v1470_v45  ;;  %537 = vmatprep.subr.bf16.mxu1 %v1472_v46  ;;  %v1465_v45 = vcombine.low %v94_v31, %v98_v32  ;;  %v110_v46 = vld [vmem:[#allocation3 + $0x190] sm:$0xff]  ;;  %v119_v58 = vld [vmem:[#allocation3 + $0x1d8] sm:$0xff]  ;;  %v1671_v21 = vld [vmem:[#allocation6 + $0xe0] sm:$0xff]  }
  0x3e   :  { %v122_v55 = vld [vmem:[#allocation3 + $0x1f0] sm:$0xff]  ;;  %v1482_v57 = vcombine.high %v110_v46, %v114_v47  ;;  %v1667_v18 = vld [vmem:[#allocation6 + $0xd8] sm:$0xff]   ;;  %v1673_v23 = vld [vmem:[#allocation6 + $0xa0] sm:$0xff]  }
  0x3f   :  { %v1490_v63 = vcombine.high %v118_v54, %v122_v55  ;;  %v1489_v3 = vcombine.low %v118_v54, %v122_v55  ;;  %v1662_v13 = vld [vmem:[#allocation6 + $0x50] sm:$0xff]   ;;  %v1669_v20 = vld [vmem:[#allocation6 + $0x98] sm:$0xff]   ;;  %v1674_v24 = vld [vmem:[#allocation6 + $0x68] sm:$0xff]  }
  0x40   :  { %497 = vmatpush1.bf16.msra.mxu0 %v1469_v51  ;;  %538 = vmatpush1.bf16.msra.mxu1 %v1471_v52  ;;  %v115_v51 = vld [vmem:[#allocation3 + $0x1b8] sm:$0xff]  ;;  %v1476_v52 = vcombine.high %v103_v42, %v107_v43  ;;  %v1664_v15 = vld [vmem:[#allocation6 + $0x10] sm:$0xff]   ;;  %v1677_v27 = vld [vmem:[#allocation6 + $0xa8] sm:$0xff]  }
  0x41   :  { %498 = vmatprep.subr.bf16.mxu0 %v1478_v53  ;;  %539 = vmatprep.subr.bf16.mxu1 %v1480_v56  ;;  %v1473_v53 = vcombine.low %v102_v39, %v106_v40  ;;  %v1475_v56 = vcombine.low %v103_v42, %v107_v43  ;;  %v1484_v60 = vcombine.high %v111_v50, %v115_v51  ;;  %v1678_v28 = vld [vmem:[#allocation6 + $0x70] sm:$0xff]   ;;  %v1685_v35 = vld [vmem:[#allocation6 + $0xb8] sm:$0xff]   ;;  %v1686_v36 = vld [vmem:[#allocation6 + $0x140] sm:$0xff]  }
  0x44   :  { %499 = vmatpush1.bf16.msra.mxu0 %v1477_v59  ;;  %540 = vmatpush1.bf16.msra.mxu1 %v1479_v61  ;;  %v123_v59 = vld [vmem:[#allocation3 + $0x1f8] sm:$0xff]  ;;  %v1481_v61 = vcombine.low %v110_v46, %v114_v47 }
  0x45   :  { %500 = vmatprep.subr.bf16.mxu0 %v1486_v62  ;;  %541 = vmatprep.subr.bf16.mxu1 %v1488_v1  ;;  %v1483_v62 = vcombine.low %v111_v50, %v115_v51  ;;  %v1492_v1 = vcombine.high %v119_v58, %v123_v59 }
  0x48   :  { %501 = vmatpush1.bf16.msra.mxu0 %v1485_v5  ;;  %542 = vmatpush1.bf16.msra.mxu1 %v1487_v7  ;;  %v1491_v5 = vcombine.low %v119_v58, %v123_v59  ;;  %v1657_v7 = vld [vmem:[#allocation6 + $0x80] sm:$0xff]  }
  0x49   :  { %568 = vmatprep.subr.bf16.mxu0 %v1434_v8  ;;  %609 = vmatprep.subr.bf16.mxu1 %v1436_v10  ;;  %v1658_v8 = vld [vmem:[#allocation6 + $0x48] sm:$0xff]  }
  0x4a   :  { %v1660_v10 = vld [vmem:[#allocation6 + $0x8] sm:$0xff]  }
  0x4b   :  { %519 = vmatmul.mubr.bf16.vlgmr.msra.gmra.mrb[0].mxu0 %v1888_v12  ;;  %560 = vmatmul.mubr.bf16.vlgmr.msra.gmra.mrb[0].mxu1 %v1888_v12 }
  0x4c   :  { %569 = vmatpush1.bf16.msra.mxu0 %v1433_v14  ;;  %610 = vmatpush1.bf16.msra.mxu1 %v1435_v16  ;;  %v1663_v14 = vld [vmem:[#allocation6 + $0xd0] sm:$0xff]  }
  0x4d   :  { %570 = vmatprep.subr.bf16.mxu0 %v1442_v17  ;;  %611 = vmatprep.subr.bf16.mxu1 %v1444_v19  ;;  %v1665_v16 = vld [vmem:[#allocation6 + $0x90] sm:$0xff]   ;;  %v1666_v17 = vld [vmem:[#allocation6 + $0x58] sm:$0xff]  }
  0x4e   :  { %600 = vmatprep.mubr.bf16.mxu0 %v1812_v0  ;;  %641 = vmatprep.mubr.bf16.mxu1 %v1812_v0  ;;  %v1466_v0 = vcombine.high %v94_v31, %v98_v32  ;;  %v1668_v19 = vld [vmem:[#allocation6 + $0x18] sm:$0xff]   ;;  %v1681_v31 = vld [vmem:[#allocation6 + $0xb0] sm:$0xff]  }
  0x4f   :  { %v1682_v32 = vld [vmem:[#allocation6 + $0x78] sm:$0xff]  }
  0x50   :  { %571 = vmatpush1.bf16.msra.mxu0 %v1441_v22  ;;  %612 = vmatpush1.bf16.msra.mxu1 %v1443_v25  ;;  %v1672_v22 = vld [vmem:[#allocation6 + $0x20] sm:$0xff]   ;;  %v1675_v25 = vld [vmem:[#allocation6 + $0xe8] sm:$0xff]  }
  0x51   :  { %572 = vmatprep.subr.bf16.mxu0 %v1450_v26  ;;  %613 = vmatprep.subr.bf16.mxu1 %v1452_v29  ;;  %v1676_v26 = vld [vmem:[#allocation6 + $0x28] sm:$0xff]   ;;  %v1679_v29 = vld [vmem:[#allocation6 + $0xf0] sm:$0xff]  }
  0x54   :  { %573 = vmatpush1.bf16.msra.mxu0 %v1449_v30  ;;  %614 = vmatpush1.bf16.msra.mxu1 %v1451_v33  ;;  %v1680_v30 = vld [vmem:[#allocation6 + $0x30] sm:$0xff]   ;;  %v1683_v33 = vld [vmem:[#allocation6 + $0xf8] sm:$0xff]  }
  0x55   :  { %574 = vmatprep.subr.bf16.mxu0 %v1458_v34  ;;  %615 = vmatprep.subr.bf16.mxu1 %v1460_v37  ;;  %v1684_v34 = vld [vmem:[#allocation6 + $0x38] sm:$0xff]   ;;  %v1687_v37 = vld [vmem:[#allocation6 + $0x1c0] sm:$0xff]  }
  0x58   :  { %575 = vmatpush1.bf16.msra.mxu0 %v1457_v38  ;;  %616 = vmatpush1.bf16.msra.mxu1 %v1459_v41  ;;  %v126_v38 = vlaneseq  ;;  %v1902_v41 = vld [vmem:[%s1974_s4] sm:$0xff] }
  0x59   :  { %576 = vmatprep.subr.bf16.mxu0 %v1466_v0  ;;  %617 = vmatprep.subr.bf16.mxu1 %v1468_v44 }
  0x5a   :  { %v1896_v39 = vshrl.u32 %v126_v38, 7  ;;  %v1705_v38 = vld [vmem:[#allocation6 + $0x1a0] sm:$0xff]  }
  0x5c   :  { %577 = vmatpush1.bf16.msra.mxu0 %v1465_v45  ;;  %618 = vmatpush1.bf16.msra.mxu1 %v1467_v48  ;;  %v128_v40 = vsub.s32 0, %v1896_v39  ;;  %v136_v0 = vsub.s32 2, %v1896_v39  ;;  %v132_v42 = vsub.s32 1, %v1896_v39  ;;  %v140_v43 = vsub.s32 3, %v1896_v39 }
  0x5d   :  { %578 = vmatprep.subr.bf16.mxu0 %v1474_v49  ;;  %619 = vmatprep.subr.bf16.mxu1 %v1476_v52 }
  0x5e   :  { %v129_v44 = vrot.slane %v1902_v41, %v128_v40  ;;  %v137_v45 = vrot.slane %v1902_v41, %v136_v0  ;;  %v133_v46 = vrot.slane %v1902_v41, %v132_v42  ;;  %v141_v47 = vrot.slane %v1902_v41, %v140_v43 }
  0x60   :  { %579 = vmatpush1.bf16.msra.mxu0 %v1473_v53  ;;  %620 = vmatpush1.bf16.msra.mxu1 %v1475_v56 }
  0x61   :  { %580 = vmatprep.subr.bf16.mxu0 %v1482_v57  ;;  %621 = vmatprep.subr.bf16.mxu1 %v1484_v60  ;;  %v674_v60 = vld [vmem:[%s1971_s1] sm:$0xff] }
  0x64   :  { %581 = vmatpush1.bf16.msra.mxu0 %v1481_v61  ;;  %622 = vmatpush1.bf16.msra.mxu1 %v1483_v62  ;;  %v675_v62 = vld [vmem:[%s1971_s1 + $0x8] sm:$0xff] }
  0x65   :  { %582 = vmatprep.subr.bf16.mxu0 %v1490_v63  ;;  %623 = vmatprep.subr.bf16.mxu1 %v1492_v1  ;;  %v676_v63 = vld [vmem:[%s1971_s1 + $0x10] sm:$0xff] }
  0x68   :  { %583 = vmatpush1.bf16.msra.mxu0 %v1489_v3  ;;  %624 = vmatpush1.bf16.msra.mxu1 %v1491_v5 }
  0x69   :  { %1558 = vmatprep.subr.bf16.mxu0 %v1654_v2  ;;  %1580 = vmatprep.subr.bf16.mxu1 %v1655_v4  ;;  %v677_v2 = vld [vmem:[%s1971_s1 + $0x18] sm:$0xff] }
  0x6b   :  { %601 = vmatmul.mubr.bf16.vlgmr.msra.gmra.mrb[4].mxu0 %v1888_v12  ;;  %642 = vmatmul.mubr.bf16.vlgmr.msra.gmra.mrb[4].mxu1 %v1888_v12  ;;  %v1670_v12 = vld [vmem:[#allocation6 + $0x60] sm:$0xff]  }
  0x6c   :  { %1559 = vmatpush3.bf16.msra.mxu0 %v1656_v6  ;;  %1581 = vmatpush3.bf16.msra.mxu1 %v1657_v7 }
  0x6d   :  { %1560 = vmatprep.subr.bf16.mxu0 %v1658_v8  ;;  %1582 = vmatprep.subr.bf16.mxu1 %v1659_v9  ;;  %v1688_v8 = vld [vmem:[#allocation6 + $0x100] sm:$0xff]  }
  0x70   :  { %1561 = vmatpush3.bf16.msra.mxu0 %v1660_v10  ;;  %1583 = vmatpush3.bf16.msra.mxu1 %v1661_v11  ;;  %v1689_v10 = vld [vmem:[#allocation6 + $0x180] sm:$0xff]   ;;  %v1690_v11 = vld [vmem:[#allocation6 + $0x148] sm:$0xff]  }
  0x71   :  { %1562 = vmatprep.subr.bf16.mxu0 %v1662_v13  ;;  %1584 = vmatprep.subr.bf16.mxu1 %v1663_v14  ;;  %v1691_v13 = vld [vmem:[#allocation6 + $0x1c8] sm:$0xff]  }
  0x72   :  { %v1692_v14 = vld [vmem:[#allocation6 + $0x108] sm:$0xff]  }
  0x74   :  { %1563 = vmatpush3.bf16.msra.mxu0 %v1664_v15  ;;  %1585 = vmatpush3.bf16.msra.mxu1 %v1665_v16  ;;  %v1693_v15 = vld [vmem:[#allocation6 + $0x188] sm:$0xff]   ;;  %v1694_v16 = vld [vmem:[#allocation6 + $0x150] sm:$0xff]  }
  0x75   :  { %1564 = vmatprep.subr.bf16.mxu0 %v1666_v17  ;;  %1586 = vmatprep.subr.bf16.mxu1 %v1667_v18  ;;  %v1695_v17 = vld [vmem:[#allocation6 + $0x1d0] sm:$0xff]  }
  0x76   :  { %v1696_v18 = vld [vmem:[#allocation6 + $0x110] sm:$0xff]  }
  0x78   :  { %1565 = vmatpush3.bf16.msra.mxu0 %v1668_v19  ;;  %1587 = vmatpush3.bf16.msra.mxu1 %v1669_v20  ;;  %v1697_v19 = vld [vmem:[#allocation6 + $0x190] sm:$0xff]   ;;  %v1698_v20 = vld [vmem:[#allocation6 + $0x158] sm:$0xff]  }
  0x79   :  { %1566 = vmatprep.subr.bf16.mxu0 %v1670_v12  ;;  %1588 = vmatprep.subr.bf16.mxu1 %v1671_v21  ;;  %v144_v12 = vsub.s32 4, %v1896_v39  ;;  %v1699_v21 = vld [vmem:[#allocation6 + $0x1d8] sm:$0xff]  }
  0x7c   :  { %1567 = vmatpush3.bf16.msra.mxu0 %v1672_v22  ;;  %1589 = vmatpush3.bf16.msra.mxu1 %v1673_v23  ;;  %v152_v22 = vsub.s32 6, %v1896_v39  ;;  %v148_v23 = vsub.s32 5, %v1896_v39 }
  0x7d   :  { %1568 = vmatprep.subr.bf16.mxu0 %v1674_v24  ;;  %1590 = vmatprep.subr.bf16.mxu1 %v1675_v25  ;;  %v156_v24 = vsub.s32 7, %v1896_v39  ;;  %v1700_v25 = vld [vmem:[#allocation6 + $0x118] sm:$0xff]   ;;  %v1706_v39 = vld [vmem:[#allocation6 + $0x168] sm:$0xff]  }
  0x80   :  { %1569 = vmatpush3.bf16.msra.mxu0 %v1676_v26  ;;  %1591 = vmatpush3.bf16.msra.mxu1 %v1677_v27  ;;  %v1701_v26 = vld [vmem:[#allocation6 + $0x198] sm:$0xff]   ;;  %v145_v27 = vrot.slane %v1902_v41, %v144_v12 }
  0x81   :  { %1570 = vmatprep.subr.bf16.mxu0 %v1678_v28  ;;  %1592 = vmatprep.subr.bf16.mxu1 %v1679_v29  ;;  %v1702_v28 = vld [vmem:[#allocation6 + $0x160] sm:$0xff]   ;;  %v153_v29 = vrot.slane %v1902_v41, %v152_v22 }
  0x84   :  { %1571 = vmatpush3.bf16.msra.mxu0 %v1680_v30  ;;  %1593 = vmatpush3.bf16.msra.mxu1 %v1681_v31  ;;  %v149_v30 = vrot.slane %v1902_v41, %v148_v23  ;;  %v1703_v31 = vld [vmem:[#allocation6 + $0x1e0] sm:$0xff]  }
  0x85   :  { %1572 = vmatprep.subr.bf16.mxu0 %v1682_v32  ;;  %1594 = vmatprep.subr.bf16.mxu1 %v1683_v33  ;;  %v157_v32 = vrot.slane %v1902_v41, %v156_v24 }
  0x88   :  { %1573 = vmatpush3.bf16.msra.mxu0 %v1684_v34  ;;  %1595 = vmatpush3.bf16.msra.mxu1 %v1685_v35  ;;  %v1704_v34 = vld [vmem:[#allocation6 + $0x120] sm:$0xff]  }
  0x89   :  { %1602 = vmatprep.subr.bf16.mxu0 %v1686_v36  ;;  %1624 = vmatprep.subr.bf16.mxu1 %v1687_v37 }
 0x11e   :  { %v520_v48 = vpop.f32.mrb[0].mxu0  ;;  %v561_v50 = vpop.f32.mrb[0].mxu1 }
 0x11f   :  { %v521_v49 = vadd.f32 %v520_v48, %v129_v44  ;;  %v522_v51 = vpop.f32.mrb[1].mxu0  ;;  %v562_v52 = vadd.f32 %v561_v50, %v137_v45  ;;  %v563_v54 = vpop.f32.mrb[1].mxu1  ;;  %v1707_v44 = vld [vmem:[#allocation6 + $0x1e8] sm:$0xff]   ;;  %v1710_v50 = vld [vmem:[#allocation6 + $0x170] sm:$0xff]  }
 0x120   :  { %v523_v53 = vadd.f32 %v522_v51, %v133_v46  ;;  %v524_v55 = vpop.f32.mrb[2].mxu0  ;;  %v564_v56 = vadd.f32 %v563_v54, %v141_v47  ;;  %v565_v57 = vpop.f32.mrb[2].mxu1  ;;  %v1708_v48 = vld [vmem:[#allocation6 + $0x128] sm:$0xff]   ;;  %v1711_v51 = vld [vmem:[#allocation6 + $0x1f0] sm:$0xff]   ;;  %v1714_v54 = vld [vmem:[#allocation6 + $0x178] sm:$0xff]  }
 0x121   :  { %1718 = vtanh.f32 %v521_v49  ;;  %v525_v58 = vpop.f32.mrb[3].mxu0  ;;  %v566_v59 = vpop.f32.mrb[3].mxu1  ;;  %v1709_v49 = vld [vmem:[#allocation6 + $0x1a8] sm:$0xff]   ;;  %v1715_v55 = vld [vmem:[#allocation6 + $0x1f8] sm:$0xff]  }
 0x122   :  { %1720 = vtanh.f32 %v562_v52  ;;  %v1712_v52 = vld [vmem:[#allocation6 + $0x130] sm:$0xff]   ;;  %v1717_v58 = vld [vmem:[#allocation6 + $0x1b8] sm:$0xff]   ;;  %v679_v59 = vld [vmem:[%s1971_s1 + $0x28] sm:$0xff] }
 0x123   :  { %1722 = vtanh.f32 %v523_v53  ;;  %v1713_v53 = vld [vmem:[#allocation6 + $0x1b0] sm:$0xff]  }
 0x124   :  { %1724 = vtanh.f32 %v564_v56  ;;  %v1716_v56 = vld [vmem:[#allocation6 + $0x138] sm:$0xff]  }
 0x12b   :  { %v1719_v61 = vpop.eup %1718 }
 0x12c   :  { %v1721_v1 = vpop.eup %1720  ;;  %658 = vst [vmem:[#allocation8] sm:$0xff] %v1719_v61  ;;  %v706_v4 = vpack.c.bf16 %v674_v60, %v1719_v61  ;;  %v680_v60 = vld [vmem:[%s1971_s1 + $0x30] sm:$0xff] }
 0x12d   :  { %v1723_v3 = vpop.eup %1722  ;;  %660 = vst [vmem:[#allocation8 + $0x10] sm:$0xff] %v1721_v1  ;;  %v708_v7 = vpack.c.bf16 %v676_v63, %v1721_v1  ;;  %v678_v63 = vld [vmem:[%s1971_s1 + $0x20] sm:$0xff] }
 0x12e   :  { %v1725_v5 = vpop.eup %1724  ;;  %659 = vst [vmem:[#allocation8 + $0x8] sm:$0xff] %v1723_v3  ;;  %v707_v6 = vpack.c.bf16 %v675_v62, %v1723_v3  ;;  %v681_v62 = vld [vmem:[%s1971_s1 + $0x38] sm:$0xff] }
 0x12f   :  { %661 = vst [vmem:[#allocation8 + $0x18] sm:$0xff] %v1725_v5  ;;  %v709_v9 = vpack.c.bf16 %v677_v2, %v1725_v5 }
 0x130   :  { %1265 = vmatprep.mubr.bf16.mxu0 %v707_v6 }
 0x131   :  { %1306 = vmatprep.mubr.bf16.mxu1 %v709_v9  ;;  %1266 = vmatmul.mubr.bf16.vlgmr.msra.gmra.mrb[8].mxu0 %v706_v4  ;;  %v1493_v9 = vld [vmem:[%s1976_s6] ss:$0 sm:$0xff] }
 0x132   :  { %1307 = vmatmul.mubr.bf16.vlgmr.msra.gmra.mrb[8].mxu1 %v708_v7  ;;  %1603 = vmatpush3.bf16.msra.mxu0 %v1688_v8 }
 0x133   :  { %1625 = vmatpush3.bf16.msra.mxu1 %v1689_v10  ;;  %1604 = vmatprep.subr.bf16.mxu0 %v1690_v11 }
 0x134   :  { %1626 = vmatprep.subr.bf16.mxu1 %v1691_v13 }
 0x136   :  { %1605 = vmatpush3.bf16.msra.mxu0 %v1692_v14 }
 0x137   :  { %1627 = vmatpush3.bf16.msra.mxu1 %v1693_v15  ;;  %1606 = vmatprep.subr.bf16.mxu0 %v1694_v16 }
 0x138   :  { %1628 = vmatprep.subr.bf16.mxu1 %v1695_v17 }
 0x13a   :  { %1607 = vmatpush3.bf16.msra.mxu0 %v1696_v18 }
 0x13b   :  { %1629 = vmatpush3.bf16.msra.mxu1 %v1697_v19  ;;  %1608 = vmatprep.subr.bf16.mxu0 %v1698_v20 }
 0x13c   :  { %1630 = vmatprep.subr.bf16.mxu1 %v1699_v21 }
 0x13e   :  { %1609 = vmatpush3.bf16.msra.mxu0 %v1700_v25  ;;  %v602_v33 = vpop.f32.mrb[4].mxu0  ;;  %v643_v36 = vpop.f32.mrb[4].mxu1 }
 0x13f   :  { %1631 = vmatpush3.bf16.msra.mxu1 %v1701_v26  ;;  %v603_v35 = vadd.f32 %v602_v33, %v145_v27  ;;  %v604_v37 = vpop.f32.mrb[5].mxu0  ;;  %1610 = vmatprep.subr.bf16.mxu0 %v1702_v28  ;;  %v644_v40 = vadd.f32 %v643_v36, %v153_v29  ;;  %v645_v42 = vpop.f32.mrb[5].mxu1 }
 0x140   :  { %v605_v0 = vadd.f32 %v604_v37, %v149_v30  ;;  %v606_v43 = vpop.f32.mrb[6].mxu0  ;;  %1632 = vmatprep.subr.bf16.mxu1 %v1703_v31  ;;  %v646_v45 = vadd.f32 %v645_v42, %v157_v32  ;;  %v647_v46 = vpop.f32.mrb[6].mxu1 }
 0x141   :  { %1726 = vtanh.f32 %v603_v35  ;;  %v607_v41 = vpop.f32.mrb[7].mxu0  ;;  %v648_v47 = vpop.f32.mrb[7].mxu1 }
 0x142   :  { %1728 = vtanh.f32 %v644_v40  ;;  %1611 = vmatpush3.bf16.msra.mxu0 %v1704_v34 }
 0x143   :  { %1730 = vtanh.f32 %v605_v0  ;;  %1633 = vmatpush3.bf16.msra.mxu1 %v1705_v38  ;;  %1612 = vmatprep.subr.bf16.mxu0 %v1706_v39  ;;  %v1399_v39 = vld [vmem:[%s1972_s2] sm:$0xff] }
 0x144   :  { %1732 = vtanh.f32 %v646_v45  ;;  %1634 = vmatprep.subr.bf16.mxu1 %v1707_v44  ;;  %v1400_v44 = vld [vmem:[%s1972_s2 + $0x8] sm:$0xff] }
 0x146   :  { %1613 = vmatpush3.bf16.msra.mxu0 %v1708_v48 }
 0x147   :  { %1635 = vmatpush3.bf16.msra.mxu1 %v1709_v49  ;;  %1614 = vmatprep.subr.bf16.mxu0 %v1710_v50 }
 0x148   :  { %1636 = vmatprep.subr.bf16.mxu1 %v1711_v51 }
 0x14a   :  { %1615 = vmatpush3.bf16.msra.mxu0 %v1712_v52 }
 0x14b   :  { %v1727_v57 = vpop.eup %1726  ;;  %1637 = vmatpush3.bf16.msra.mxu1 %v1713_v53  ;;  %1616 = vmatprep.subr.bf16.mxu0 %v1714_v54 }
 0x14c   :  { %v1729_v61 = vpop.eup %1728  ;;  %662 = vst [vmem:[#allocation8 + $0x20] sm:$0xff] %v1727_v57  ;;  %1638 = vmatprep.subr.bf16.mxu1 %v1715_v55  ;;  %v710_v6 = vpack.c.bf16 %v678_v63, %v1727_v57 }
 0x14d   :  { %v1731_v1 = vpop.eup %1730  ;;  %664 = vst [vmem:[#allocation8 + $0x30] sm:$0xff] %v1729_v61  ;;  %v712_v4 = vpack.c.bf16 %v680_v60, %v1729_v61 }
 0x14e   :  { %v1733_v2 = vpop.eup %1732  ;;  %663 = vst [vmem:[#allocation8 + $0x28] sm:$0xff] %v1731_v1  ;;  %1617 = vmatpush3.bf16.msra.mxu0 %v1716_v56  ;;  %v711_v3 = vpack.c.bf16 %v679_v59, %v1731_v1 }
 0x14f   :  { %665 = vst [vmem:[#allocation8 + $0x38] sm:$0xff] %v1733_v2  ;;  %1639 = vmatpush3.bf16.msra.mxu1 %v1717_v58  ;;  %v713_v5 = vpack.c.bf16 %v681_v62, %v1733_v2 }
 0x150   :  { %1347 = vmatprep.mubr.bf16.mxu0 %v711_v3 }
 0x151   :  { %1388 = vmatprep.mubr.bf16.mxu1 %v713_v5  ;;  %1348 = vmatmul.mubr.bf16.vlgmr.msra.gmra.mrb[12].mxu0 %v710_v6 }
 0x152   :  { %1389 = vmatmul.mubr.bf16.vlgmr.msra.gmra.mrb[12].mxu1 %v712_v4 }
 0x204   :  { %v1574_v7 = vpop.f32.mrb[8].mxu0 }
 0x205   :  { %v1596_v8 = vpop.f32.mrb[8].mxu1  ;;  %v1575_v10 = vpop.f32.mrb[9].mxu0 }
 0x206   :  { %v1576_v11 = vadd.f32 %v1575_v10, %v1574_v7  ;;  %v1597_v13 = vpop.f32.mrb[9].mxu1  ;;  %v1577_v14 = vpop.f32.mrb[10].mxu0 }
 0x207   :  { %v1598_v15 = vadd.f32 %v1597_v13, %v1596_v8  ;;  %v1599_v16 = vpop.f32.mrb[10].mxu1  ;;  %v1578_v17 = vpop.f32.mrb[11].mxu0 }
 0x208   :  { %v1268_v18 = vadd.f32 %v1576_v11, %v1493_v9  ;;  %v1579_v19 = vadd.f32 %v1578_v17, %v1577_v14  ;;  %v1600_v20 = vpop.f32.mrb[11].mxu1 }
 0x209   :  { %v1601_v12 = vadd.f32 %v1600_v20, %v1599_v16 }
 0x20a   :  { %v1309_v21 = vadd.f32 %v1598_v15, %v1268_v18  ;;  %v1271_v22 = vadd.f32 %v1579_v19, %v1493_v9 }
 0x20c   :  { %v1312_v23 = vadd.f32 %v1601_v12, %v1271_v22 }
 0x224   :  { %v1618_v24 = vpop.f32.mrb[12].mxu0 }
 0x225   :  { %v1640_v25 = vpop.f32.mrb[12].mxu1  ;;  %v1619_v26 = vpop.f32.mrb[13].mxu0 }
 0x226   :  { %v1620_v27 = vadd.f32 %v1619_v26, %v1618_v24  ;;  %v1641_v28 = vpop.f32.mrb[13].mxu1  ;;  %v1621_v29 = vpop.f32.mrb[14].mxu0 }
 0x227   :  { %v1642_v30 = vadd.f32 %v1641_v28, %v1640_v25  ;;  %v1643_v31 = vpop.f32.mrb[14].mxu1  ;;  %v1622_v32 = vpop.f32.mrb[15].mxu0 }
 0x228   :  { %v1350_v33 = vadd.f32 %v1620_v27, %v1309_v21  ;;  %v1623_v34 = vadd.f32 %v1622_v32, %v1621_v29  ;;  %v1644_v35 = vpop.f32.mrb[15].mxu1 }
 0x229   :  { %v1645_v36 = vadd.f32 %v1644_v35, %v1643_v31 }
 0x22a   :  { %v1353_v37 = vadd.f32 %v1623_v34, %v1312_v23  ;;  %v1391_v38 = vadd.f32 %v1642_v30, %v1350_v33 }
 0x22c   :  { %v1394_v40 = vadd.f32 %v1645_v36, %v1353_v37  ;;  %v1397_v0 = vmax.f32 %v1391_v38, 0.0 }
 0x22e   :  { %v1398_v42 = vmax.f32 %v1394_v40, 0.0  ;;  %v1401_v43 = vmul.f32 %v1399_v39, %v1397_v0 }
 0x230   :  { %1403 = vadd.xlane.f32.xlu0 %v1401_v43  ;;  %v1402_v45 = vmul.f32 %v1400_v44, %v1398_v42 }
 0x234   :  { %1405 = vadd.xlane.f32.xlu0 %v1402_v45 }
 0x235   :  { %1789 = shalt.err (!%p1786_p6)
}
 0x236   :  { %s1790_s11 = scalar_lea.hbm %s1977_s7, 1024 }
 0x237   :  { %p1791_p7 = scmp.ne.s32.totalorder %s1977_s7, %s1790_s11  ;;  %p1794_p8 = scmp.lt.u32.totalorder %s1790_s11, %s1977_s7 }
 0x239   :  { %p1796_p9 = pnand %p1794_p8, %p1791_p7 }
 0x23b   :  { %1799 = shalt.err (!%p1796_p9)
}
 0x23c   :  { %1418 = dma.vmem_to_hbm [thread:$0]  %s1416_s9, 1024, %s1977_s7, [#allocation5]  }
 0x2bd   :  { %v1404_v46 = vpop.xlane.xlu0 %1403 }
 0x2be   :  { %1407 = vst [vmem:[%s1978_s8] sm:$0xff] %v1404_v46 }
 0x2c1   :  { %v1406_v41 = vpop.xlane.xlu0 %1405 }
 0x2c2   :  { %1408 = vst [vmem:[%s1978_s8 + $0x8] sm:$0xff] %v1406_v41 }
 0x2c3   :  { %1804 = dma.done.wait [#allocation5], 1024  }
 0x2c4   :  { %1805 = vsyncadd [#allocation5], 4294966272 }
 0x2c5   :  { %1426 = vsyncpa [#allocation4], 1 }
 0x2c6   :  { %1427 = vsyncpa [#allocation7], 1 }
 0x2c7   :  { %1428 = vsyncpa [#allocation5], 1 }

</bundles_post_ra>
